<compile_context>
chip_gen: v6e
topology: v6e:2x2x1
jax: 0.10.0
libtpu: 0.0.40
codegen_flags: <defaults>
</compile_context>

<pallas_src>
import functools
import math
from typing import NamedTuple, Tuple

import numpy as np
import jax
import jax.numpy as jnp
from jax.experimental import pallas as pl
from jax.experimental.pallas import tpu as pltpu


_LANE_CAP = 65536                         # max lanes per block
_DEFAULT_BLOCK_BYTES = 2 * 1024 * 1024    # ~2 MiB f32 per block
_VMEM_LIMIT_BYTES = 32 * 1024 * 1024      # safe on v5e/v6e/v7x


# ---------------------------------------------------------------------------
# Constant sinusoidal table (same math as the torch __init__).
# ---------------------------------------------------------------------------
def make_positional_encoding_table(d_model: int, max_len: int = 100) -> jnp.ndarray:
    position = np.arange(0, max_len, dtype=np.float32)[:, None]             # [max_len, 1]
    div_term = np.exp(np.arange(0, d_model, 2, dtype=np.float32)
                      * (-np.log(10000.0) / d_model))                        # [d_model/2]
    pe = np.zeros((max_len, d_model), dtype=np.float32)
    pe[:, 0::2] = np.sin(position * div_term)
    pe[:, 1::2] = np.cos(position * div_term)
    return jnp.asarray(pe)                                                   # [max_len, d_model]


# ---------------------------------------------------------------------------
# Tiling planner.
# ---------------------------------------------------------------------------
def _cdiv(a: int, b: int) -> int:
    return -(-a // b)


def _round_up(a: int, m: int) -> int:
    return _cdiv(a, m) * m


def _largest_divisor_multiple_of(n: int, unit: int, cap: int) -> int:
    """Largest t with t % unit == 0, n % t == 0 and t <= cap (requires unit | n)."""
    m = n // unit
    limit = max(1, min(cap // unit, m))
    for k in range(limit, 0, -1):
        if m % k == 0:
            return k * unit
    return unit


def _pick_row_tile(n_lane: int, total_rows: int, budget: int) -> Tuple[int, int]:
    """Row tile tb (multiple of 8) and number of distinct PE row-blocks.

    Either tb | n_lane (PE view (n_lane, tl), cycled via a modular index map) or
    n_lane | tb (PE pre-tiled to (tb, tl), held with a constant block index).
    """
    if n_lane % 8 == 0 and n_lane > budget:
        tb = _largest_divisor_multiple_of(n_lane, 8, budget)
        return tb, n_lane // tb
    unit = (n_lane * 8) // math.gcd(n_lane, 8)           # lcm(n_lane, 8)
    tb = max(unit, (budget // unit) * unit)
    tb = min(tb, _round_up(total_rows, unit))            # don't exceed the data
    return tb, 1


class _Plan(NamedTuple):
    layout: str              # "folded" | "bcast"
    tl: int                  # lane tile
    tb: int                  # row (sublane) tile
    n_lane: int              # lane-chunks per batch element (folded layout)
    pe_blocks: int           # distinct PE row-blocks (1 => constant block index)
    grid: Tuple[int, ...]
    total_rows: int          # rows of the 2-D view fed to the kernel


@functools.lru_cache(maxsize=None)
def _make_plan(B: int, S: int, D: int, block_cap_bytes: int) -> _Plan:
    N = S * D
    cap_elems = max(8 * 128, block_cap_bytes // 4)       # f32 elements per block

    if N % 128 == 0:
        # Folded layout: x viewed as (B * n_lane, tl) with tl | N -> exact tiles.
        lane_cap = min(_LANE_CAP, max(128, (cap_elems // 8) // 128 * 128))
        while True:
            tl = _largest_divisor_multiple_of(N, 128, lane_cap)
            n_lane = N // tl
            total_rows = B * n_lane
            budget = max(8, (cap_elems // tl) // 8 * 8)
            tb, pe_blocks = _pick_row_tile(n_lane, total_rows, budget)
            if tb * tl <= 2 * cap_elems:
                grid_rows = _cdiv(total_rows, tb)
                if grid_rows < 2:
                    # v7x megacore: expose >= 2 parallel grid steps if possible.
                    tb2, pb2 = _pick_row_tile(
                        n_lane, total_rows, max(8, (total_rows // 2) // 8 * 8))
                    if _cdiv(total_rows, tb2) >= 2 and tb2 * tl <= 2 * cap_elems:
                        tb, pe_blocks = tb2, pb2
                        grid_rows = _cdiv(total_rows, tb)
                return _Plan("folded", tl, tb, n_lane, pe_blocks,
                             (grid_rows,), total_rows)
            if tl <= 128:
                break                                    # give up -> broadcast layout
            lane_cap = tl // 2

    # Broadcast layout: x viewed as (B, N); fixed 8/128-multiple tiles, cdiv grid,
    # ragged tail blocks masked by Pallas.
    lane_cap = min(_LANE_CAP, max(128, (cap_elems // 8) // 128 * 128))
    tl = min(_round_up(N, 128), lane_cap)
    budget = max(8, (cap_elems // tl) // 8 * 8)
    tb = min(budget, _round_up(B, 8))
    grid_lanes, grid_rows = _cdiv(N, tl), _cdiv(B, tb)
    if grid_lanes * grid_rows < 2:
        # v7x megacore: split rows first, lanes otherwise.
        if B > 8:
            tb = _round_up(_cdiv(B, 2), 8)
        elif _round_up(N, 128) >= 256:
            tl = _round_up(_cdiv(N, 2), 128)
        grid_lanes, grid_rows = _cdiv(N, tl), _cdiv(B, tb)
    return _Plan("bcast", tl, tb, 1, 1, (grid_lanes, grid_rows), B)


def prepare_pe_operand(pe_table, B, S, D, block_cap_bytes=_DEFAULT_BLOCK_BYTES):
    """Slice / reshape / pre-tile the constant PE buffer for a given activation
    shape.  Hoisted out of the per-call path (cached by PositionalEncoding)."""
    plan = _make_plan(int(B), int(S), int(D), int(block_cap_bytes))
    pe = pe_table[0] if pe_table.ndim == 3 else pe_table          # [max_len, D]
    pe = pe[:S, :].astype(jnp.float32)                            # [S, D]
    if plan.layout == "folded":
        pe = pe.reshape(plan.n_lane, plan.tl)
        if plan.pe_blocks == 1 and plan.tb > plan.n_lane:
            pe = jnp.tile(pe, (plan.tb // plan.n_lane, 1))        # (tb, tl), constant block
    else:
        pe = pe.reshape(1, S * D)
    return plan, pe


# ---------------------------------------------------------------------------
# Kernel + forward.
# ---------------------------------------------------------------------------
def _pe_add_kernel(x_ref, pe_ref, o_ref):
    # x tile is cast to f32 on the VPU (matches torch's x.float()); PE is f32.
    # Broadcasting over sublanes handles the (1, tl) PE block in the bcast path.
    o_ref[...] = (x_ref[...].astype(jnp.float32) + pe_ref[...]).astype(o_ref.dtype)


def positional_encoding_forward(x, pe_table, *, out_dtype=jnp.float32,
                                block_cap_bytes=_DEFAULT_BLOCK_BYTES,
                                xla_fallback_bytes=0,
                                plan=None, pe_operand=None):
    """Equivalent of PositionalEncoding.forward: x.float() + pe[:, :x.shape[1]]."""
    B, S, D = x.shape
    pe2d = pe_table[0] if pe_table.ndim == 3 else pe_table
    if S > pe2d.shape[0]:
        raise ValueError(f"sequence length {S} exceeds max_len {pe2d.shape[0]}")
    N = S * D

    # Optional fast path for tiny activations: a standalone pallas_call costs more
    # in launch/per-step overhead than the data movement; let XLA fuse the add.
    # Disabled by default so this script always exercises the Pallas kernel.
    if B * N * 4 < xla_fallback_bytes:
        return (x.astype(jnp.float32) + pe2d[None, :S, :]).astype(out_dtype)

    if plan is None or pe_operand is None:
        plan, pe_operand = prepare_pe_operand(pe2d, B, S, D, block_cap_bytes)

    cparams = pltpu.CompilerParams(
        dimension_semantics=("parallel",) * len(plan.grid),
        vmem_limit_bytes=_VMEM_LIMIT_BYTES,
    )

    if plan.layout == "folded":
        x2 = x.reshape(plan.total_rows, plan.tl)
        pe_blocks = plan.pe_blocks
        if pe_blocks == 1:
            pe_map = lambda i: (0, 0)                 # resident; fetched once
        else:
            pe_map = lambda i: (i % pe_blocks, 0)     # cycles once per batch element
        out2 = pl.pallas_call(
            _pe_add_kernel,
            out_shape=jax.ShapeDtypeStruct((plan.total_rows, plan.tl), out_dtype),
            grid=plan.grid,
            in_specs=[pl.BlockSpec((plan.tb, plan.tl), lambda i: (i, 0)),
                      pl.BlockSpec((plan.tb, plan.tl), pe_map)],
            out_specs=pl.BlockSpec((plan.tb, plan.tl), lambda i: (i, 0)),
            compiler_params=cparams,
        )(x2, pe_operand)
    else:
        x2 = x.reshape(B, N)
        # Row axis is the inner (fastest) grid axis, so the PE chunk's block
        # index (0, j) is constant over it and is not re-fetched per row step.
        out2 = pl.pallas_call(
            _pe_add_kernel,
            out_shape=jax.ShapeDtypeStruct((B, N), out_dtype),
            grid=plan.grid,
            in_specs=[pl.BlockSpec((plan.tb, plan.tl), lambda j, i: (i, j)),
                      pl.BlockSpec((1, plan.tl), lambda j, i: (0, j))],
            out_specs=pl.BlockSpec((plan.tb, plan.tl), lambda j, i: (i, j)),
            compiler_params=cparams,
        )(x2, pe_operand)

    return out2.reshape(B, S, D)


class PositionalEncoding:
    """Drop-in equivalent of the torch module (call with x: [B, S, d_model])."""

    def __init__(self, d_model, max_len=100, block_cap_bytes=_DEFAULT_BLOCK_BYTES):
        self.d_model = d_model
        self.max_len = max_len
        self.block_cap_bytes = block_cap_bytes
        self.pe = make_positional_encoding_table(d_model, max_len)   # [max_len, d_model]
        self._prepared = {}   # (B, S, D) -> (plan, device-ready PE operand)

    def __call__(self, x, out_dtype=jnp.float32, xla_fallback_bytes=0):
        B, S, D = x.shape
        key = (B, S, D)
        if key not in self._prepared:
            self._prepared[key] = prepare_pe_operand(
                self.pe, B, S, D, self.block_cap_bytes)
        plan, pe_operand = self._prepared[key]
        return positional_encoding_forward(
            x, self.pe, out_dtype=out_dtype,
            block_cap_bytes=self.block_cap_bytes,
            xla_fallback_bytes=xla_fallback_bytes,
            plan=plan, pe_operand=pe_operand)


if __name__ == "__main__":
    key = jax.random.PRNGKey(0)
    k0, k1, k2 = jax.random.split(key, 3)

    # --- primary check: small module-sized shapes (folded layout, tiny batch) ---
    d_model, max_len, batch, seq = 32, 100, 2, 8
    module = PositionalEncoding(d_model, max_len)
    x = jax.random.normal(k0, (batch, seq, d_model), dtype=jnp.float32)
    out = jax.block_until_ready(module(x))
    ref = x.astype(jnp.float32) + module.pe[None, :seq, :]
    assert out.shape == (batch, seq, d_model) and out.dtype == jnp.float32
    np.testing.assert_allclose(np.asarray(out), np.asarray(ref), rtol=1e-6, atol=1e-6)

    # --- folded layout with a >=2-step parallel grid (bf16 input, f32 out) ---
    xb = jax.random.normal(k1, (16, seq, d_model), dtype=jnp.bfloat16)
    outb = jax.block_until_ready(module(xb))
    refb = xb.astype(jnp.float32) + module.pe[None, :seq, :]
    np.testing.assert_allclose(np.asarray(outb), np.asarray(refb), rtol=1e-6, atol=1e-6)

    # --- awkward shape (S*D not a multiple of 128) -> cdiv-tiled broadcast path ---
    pe20 = make_positional_encoding_table(20, max_len)
    xc = jax.random.normal(k2, (3, 7, 20), dtype=jnp.float32)
    outc = jax.block_until_ready(positional_encoding_forward(xc, pe20))
    refc = xc.astype(jnp.float32) + pe20[None, :7, :]
    np.testing.assert_allclose(np.asarray(outc), np.asarray(refc), rtol=1e-6, atol=1e-6)

    print("KERNEL_OK")
</pallas_src>

<mosaic_0001>
module attributes {stable_mosaic.version = 11 : i64} {
  func.func @_pe_add_kernel(%arg0: i32, %arg1: memref<8x256xf32, #tpu.memory_space<vmem>>, %arg2: memref<8x256xf32, #tpu.memory_space<vmem>>, %arg3: memref<8x256xf32, #tpu.memory_space<vmem>>) attributes {dimension_semantics = [#tpu.dimension_semantics<parallel>], iteration_bounds = array<i64: 1>, scalar_prefetch = 0 : i64, scratch_operands = 0 : i64, tpu.core_type = #tpu.core_type<tc>, window_params = [{transform_indices = @transform_0, window_bounds = array<i64: 8, 256>}, {pipeline_mode = #tpu.pipeline_mode<synchronous>, transform_indices = @transform_1, window_bounds = array<i64: 8, 256>}, {transform_indices = @transform_2, window_bounds = array<i64: 8, 256>}]} {
    %c0 = arith.constant 0 : index
    %c0_0 = arith.constant 0 : index
    %0 = vector.load %arg1[%c0, %c0_0] : memref<8x256xf32, #tpu.memory_space<vmem>>, vector<8x256xf32>
    %c0_1 = arith.constant 0 : index
    %c0_2 = arith.constant 0 : index
    %1 = vector.load %arg2[%c0_1, %c0_2] : memref<8x256xf32, #tpu.memory_space<vmem>>, vector<8x256xf32>
    %2 = arith.addf %0, %1 : vector<8x256xf32>
    %c0_3 = arith.constant 0 : index
    %c0_4 = arith.constant 0 : index
    %3 = vector.load %arg3[%c0_3, %c0_4] : memref<8x256xf32, #tpu.memory_space<vmem>>, vector<8x256xf32>
    tpu.vector_store %arg3[%c0_3, %c0_4], %2 {strides = array<i32>} : memref<8x256xf32, #tpu.memory_space<vmem>>, vector<8x256xf32>,
    return
  }
  func.func @transform_0(%arg0: i32) -> (i32, i32) {
    %c0_i32 = arith.constant 0 : i32
    %c0_i32_0 = arith.constant 0 : i32
    return %arg0, %c0_i32 : i32, i32
  }
  func.func @transform_1(%arg0: i32) -> (i32, i32) {
    %c0_i32 = arith.constant 0 : i32
    %c0_i32_0 = arith.constant 0 : i32
    %c0_i32_1 = arith.constant 0 : i32
    return %c0_i32, %c0_i32_0 : i32, i32
  }
  func.func @transform_2(%arg0: i32) -> (i32, i32) {
    %c0_i32 = arith.constant 0 : i32
    %c0_i32_0 = arith.constant 0 : i32
    return %arg0, %c0_i32 : i32, i32
  }
}

</mosaic_0001>

<bundles_post_ra>
// kernel: tpu_custom_call.1
= control target key start
LH: loop header
LB: loop body
LE: loop exit
PB: predicated region body
PF: predicated region fallthrough
CT: control target
= control target key end

     0   :  { %7 = vsyncpa [#allocation3], 0  ;;  %s205_s0 = inlined_call_operand.hbm [shape: f32[2,256], index: 0, kind: input, shape index: {}]   ;;  %s206_s1 = inlined_call_operand.hbm [shape: f32[8,256], index: 1, kind: input, shape index: {}]   ;;  %s207_s2 = inlined_call_operand.hbm [shape: f32[2,256], index: 2, kind: output, shape index: {}]  }
   0x1   :  { %8 = vsyncpa [#allocation6], 0 }
   0x2   :  { %9 = vsyncpa [#allocation4], 0 }
   0x3   :  { %14 = vsyncadd [#allocation3], 192  ;;  %s169_s9 = smov [#allocation2]  }
   0x4   :  { %s15_s10 = sshll.u32 %s169_s9, 4  ;;  %s16_s10 = int_to_ptr.vmem [resolvable:$true] %s15_s10 }
   0x5   :  { %s111_s11 = scalar_lea.vmem %s16_s10, 64  ;;  %s115_s12 = scalar_lea.vmem %s16_s10, 256 }
   0x6   :  { %p112_p0 = scmp.ne.s32.totalorder %s16_s10, %s111_s11  ;;  %p116_p1 = scmp.lt.s32.totalorder %s16_s10, %s16_s10 }
   0x7   :  { %p117_p2 = scmp.lt.s32.totalorder %s115_s12, %s111_s11 }
   0x9   :  { %p118_p3 = por %p117_p2, %p116_p1 }
   0xb   :  { %p119_p4 = pnand %p118_p3, %p112_p0 }
   0xd   :  { %122 = shalt.err (!%p119_p4)
}
   0xe   :  { %s170_s13 = smov 64   ;;  %s171_s14 = smov 4  }
   0xf   :  { %21 = dma.hbm_to_vmem [thread:$0]  %s205_s0, 64, %s16_s10, [#allocation3], %s170_s13, %s170_s13, %s171_s14  }
  0x10   :  { %s172_s17 = smov [#allocation5]  }
  0x11   :  { %s28_s18 = sshll.u32 %s172_s17, 4  ;;  %s29_s18 = int_to_ptr.vmem [resolvable:$true] %s28_s18 }
  0x12   :  { %s131_s19 = scalar_lea.vmem %s29_s18, 256  ;;  %p136_p6 = scmp.lt.s32.totalorder %s29_s18, %s29_s18 }
  0x13   :  { %p132_p5 = scmp.ne.s32.totalorder %s29_s18, %s131_s19  ;;  %p137_p7 = scmp.lt.s32.totalorder %s131_s19, %s131_s19 }
  0x15   :  { %p138_p8 = por %p137_p7, %p136_p6 }
  0x17   :  { %p139_p9 = pnand %p138_p8, %p132_p5 }
  0x19   :  { %142 = shalt.err (!%p139_p9)
}
  0x1a   :  { %31 = dma.hbm_to_vmem [thread:$0]  %s206_s1, 256, %s29_s18, [#allocation6]  }
  0x1b   :  { %163 = dma.done.wait [#allocation3], 256  }
  0x1c   :  { %164 = vsyncadd [#allocation3], 4294967040 }
  0x1d   :  { %165 = dma.done.wait [#allocation6], 256  }
  0x1e   :  { %166 = vsyncadd [#allocation6], 4294967040  ;;  %v51_v0 = vlaneseq  ;;  %v173_v1 = vmov 1983009808   ;;  %v100_v6 = vld [vmem:[#allocation5] ss:$8 sps:$4 sm:$0xff]  }
  0x1f   :  { %v49_v2 = vunpack.c.l.s4 %v173_v1  ;;  %v38_v7 = vld [vmem:[#allocation2] sm:$0xf]  ;;  %v102_v8 = vld [vmem:[#allocation5 + $0x4] ss:$8 sps:$4 sm:$0xff]   ;;  %v40_v10 = vld [vmem:[#allocation2 + $0x8] sm:$0xf] }
  0x20   :  { %v52_v3 = vshrl.u32 %v51_v0, 7  ;;  %v39_v11 = vld [vmem:[#allocation2 + $0x4] sm:$0xf]  ;;  %v41_v15 = vld [vmem:[#allocation2 + $0xc] sm:$0xf] }
  0x21   :  { %v50_v4 = vunpack.c.0.s8 %v49_v2 }
  0x23   :  { %v53_v5 = vsub.s32 %v50_v4, %v52_v3 }
  0x25   :  { %v54_v9 = vrot.slane %v100_v6, %v53_v5  ;;  %v61_v12 = vrot.slane %v102_v8, %v53_v5 }
  0x27   :  { %v68_v13 = vadd.f32 %v54_v9, %v38_v7  ;;  %v62_v14 = vcombine.high %v54_v9, %v54_v9  ;;  %v70_v16 = vadd.f32 %v61_v12, %v40_v10  ;;  %v63_v17 = vcombine.high %v61_v12, %v61_v12 }
  0x29   :  { %72 = vst [vmem:[#allocation7] sm:$0xf] %v68_v13  ;;  %v69_v18 = vadd.f32 %v62_v14, %v39_v11  ;;  %74 = vst [vmem:[#allocation7 + $0x8] sm:$0xf] %v70_v16  ;;  %v71_v19 = vadd.f32 %v63_v17, %v41_v15 }
  0x2b   :  { %73 = vst [vmem:[#allocation7 + $0x4] sm:$0xf] %v69_v18  ;;  %75 = vst [vmem:[#allocation7 + $0xc] sm:$0xf] %v71_v19 }
  0x2c   :  { %80 = vsyncadd [#allocation4], 192  ;;  %s174_s0 = smov [#allocation7]  }
  0x2d   :  { %s81_s1 = sshll.u32 %s174_s0, 4  ;;  %s82_s1 = int_to_ptr.vmem [resolvable:$true] %s81_s1 }
  0x2e   :  { %s143_s22 = scalar_lea.vmem %s82_s1, 64  ;;  %s147_s23 = scalar_lea.vmem %s82_s1, 256 }
  0x2f   :  { %p144_p10 = scmp.ne.s32.totalorder %s82_s1, %s143_s22  ;;  %p148_p11 = scmp.lt.s32.totalorder %s82_s1, %s82_s1 }
  0x30   :  { %p149_p12 = scmp.lt.s32.totalorder %s147_s23, %s143_s22 }
  0x32   :  { %p150_p13 = por %p149_p12, %p148_p11 }
  0x34   :  { %p151_p0 = pnand %p150_p13, %p144_p10 }
  0x36   :  { %154 = shalt.err (!%p151_p0)
}
  0x37   :  { %87 = dma.vmem_to_hbm [thread:$0]  %s82_s1, 64, %s207_s2, [#allocation4], %s170_s13, %s170_s13, %s171_s14  }
  0x38   :  { %167 = dma.done.wait [#allocation4], 256  }
  0x39   :  { %168 = vsyncadd [#allocation4], 4294967040 }
  0x3a   :  { %91 = vsyncpa [#allocation3], 1 }
  0x3b   :  { %92 = vsyncpa [#allocation6], 1 }
  0x3c   :  { %93 = vsyncpa [#allocation4], 1 }

</bundles_post_ra>
